<compile_context>
chip_gen: v5e
topology: v5e:2x2
jax: 0.10.0
libtpu: 0.0.40
codegen_flags: <defaults>
</compile_context>

<pallas_src>
import functools
import math

import jax
import jax.numpy as jnp
from jax.experimental import pallas as pl
from jax.experimental.pallas import tpu as pltpu


def _round_up(v, m):
    return ((v + m - 1) // m) * m


def _upsample_kernel(w_ref, b_ref, x_ref, o_ref, *, two_w):
    """One (sample, lane-block) step.

    w_ref: (4, Cout, Cin)  resident weights, leading index k = ki*2 + kj
    b_ref: (Cout, 1)       resident bias column (f32)
    x_ref: (Cin, TL)       2x-duplicated input, lanes already in final order
    o_ref: (Cout, TL)      output tile, final NCHW flat layout
    """
    x = x_ref[...]
    # Four tiny-K MXU dots (one per (ki, kj) branch); MXU has huge slack here.
    a00 = jnp.dot(w_ref[0], x, preferred_element_type=jnp.float32)
    a01 = jnp.dot(w_ref[1], x, preferred_element_type=jnp.float32)
    a10 = jnp.dot(w_ref[2], x, preferred_element_type=jnp.float32)
    a11 = jnp.dot(w_ref[3], x, preferred_element_type=jnp.float32)

    tl = x.shape[-1]
    # Block starts are multiples of 4W by construction, so local lane index is
    # enough to decode (ki, kj):  l = (2i+ki)*2W + 2j+kj
    lane = jax.lax.broadcasted_iota(jnp.int32, (1, tl), 1)
    kj_is0 = (lane % 2) == 0
    ki_is0 = (lane % (2 * two_w)) < two_w

    top = jnp.where(kj_is0, a00, a01)   # ki == 0 branch
    bot = jnp.where(kj_is0, a10, a11)   # ki == 1 branch
    acc = jnp.where(ki_is0, top, bot) + b_ref[...]
    o_ref[...] = acc.astype(o_ref.dtype)


def _vmem_plan(requested_budget=None):
    """Derive (tile budget, vmem_limit_bytes) tied together, per generation."""
    try:
        cap = int(pltpu.get_tpu_info().vmem_capacity_bytes)
    except Exception:  # conservative fallback (v7x-sized VMEM)
        cap = 64 * 1024 * 1024
    # <= 3/4 of physical VMEM, never above 96 MiB, never below 32 MiB.
    limit = max(32 * 1024 * 1024, min((cap * 3) // 4, 96 * 1024 * 1024))
    if requested_budget is None:
        budget = (limit * 3) // 4                      # ~25% headroom
    else:
        budget = min(int(requested_budget), (limit * 3) // 4)
    return budget, limit


def _pick_lane_tile(total, group, cin, cout, itemsize, budget_bytes, need_split):
    """Largest lane tile (multiple of lcm(group, 128)) fitting the VMEM budget.

    total  : flattened output pixels per (n, co)  (= 4*H*W)
    group  : 4W  (output lanes produced by one input row) -> tile alignment so
             the in-kernel iota masks are block-position independent
    """
    unit = math.lcm(group, 128)
    # Double-buffered input + output blocks, sublane-padded to 8 rows.
    per_lane = 2 * (_round_up(cin, 8) + _round_up(cout, 8)) * itemsize
    # Resident (still double-buffered) weights + bias + slack.
    fixed = (2 * 4 * _round_up(cout, 8) * 128 * itemsize
             + 2 * _round_up(cout, 8) * 128 * 4
             + (256 << 10))
    avail = max(budget_bytes - fixed, unit * per_lane)
    tl = max(unit, (avail // per_lane) // unit * unit)
    if tl >= total:
        tl = total
        if need_split and total > unit:
            # v7x megacore: guarantee >=2 grid steps when the batch axis can't.
            tl = max(unit, ((total // 2) // unit) * unit)
    return int(tl)


def transpose_upsample(x_nchw, weight, bias, *, out_dtype=None,
                       vmem_budget_bytes=None):
    """ConvTranspose2d(kernel=2, stride=2, bias=True) forward.

    x_nchw : (N, Cin, H, W)
    weight : (Cin, Cout, 2, 2)   (PyTorch ConvTranspose2d layout)
    bias   : (Cout,)
    returns: (N, Cout, 2H, 2W)   in out_dtype (default: x_nchw.dtype)
    """
    N, Cin, H, W = x_nchw.shape
    Cin_w, Cout, kH, kW = weight.shape
    assert Cin == Cin_w and kH == 2 and kW == 2

    in_dtype = x_nchw.dtype
    out_dtype = in_dtype if out_dtype is None else out_dtype
    Wo = kW * W                      # output width
    total = (kH * H) * Wo            # flattened output pixels per (n, co)
    group = kH * Wo                  # 4W: lanes produced by one input row

    # Nearest-neighbour 2x duplication (input-sized XLA op, no dtype cast):
    #   x_up[n, c, 2i+ki, 2j+kj] = x[n, c, i, j]
    # so the kernel's lane axis IS the final flattened output pixel axis.
    x_up = jnp.repeat(jnp.repeat(x_nchw, kH, axis=2), kW, axis=3)
    x_up = x_up.reshape(N, Cin, total)

    # Weights (Cin, Cout, 2, 2) -> (4, Cout, Cin) with leading k = ki*2 + kj.
    w4 = jnp.transpose(weight, (2, 3, 1, 0)).reshape(kH * kW, Cout, Cin)
    w4 = w4.astype(in_dtype)
    b_col = bias.reshape(Cout, 1).astype(jnp.float32)

    itemsize = max(jnp.dtype(in_dtype).itemsize, jnp.dtype(out_dtype).itemsize)
    budget, vmem_limit = _vmem_plan(vmem_budget_bytes)
    TL = _pick_lane_tile(total, group, Cin, Cout, itemsize, budget,
                         need_split=(N < 2))
    n_blocks = pl.cdiv(total, TL)

    kernel = functools.partial(_upsample_kernel, two_w=Wo)

    flops = 2 * (kH * kW) * Cout * Cin * N * total
    bytes_accessed = int(
        N * Cin * total * jnp.dtype(in_dtype).itemsize          # x_up read
        + N * Cout * total * jnp.dtype(out_dtype).itemsize      # output write
        + w4.size * jnp.dtype(in_dtype).itemsize + Cout * 4)

    out_flat = pl.pallas_call(
        kernel,
        out_shape=jax.ShapeDtypeStruct((N, Cout, total), out_dtype),
        grid_spec=pltpu.PrefetchScalarGridSpec(
            num_scalar_prefetch=0,
            grid=(N, n_blocks),
            in_specs=[
                pl.BlockSpec((kH * kW, Cout, Cin), lambda n, p: (0, 0, 0)),
                pl.BlockSpec((Cout, 1), lambda n, p: (0, 0)),
                pl.BlockSpec((None, Cin, TL), lambda n, p: (n, 0, p)),
            ],
            out_specs=pl.BlockSpec((None, Cout, TL), lambda n, p: (n, 0, p)),
        ),
        compiler_params=pltpu.CompilerParams(
            dimension_semantics=("parallel", "parallel"),
            vmem_limit_bytes=vmem_limit,
        ),
        cost_estimate=pl.CostEstimate(flops=flops, transcendentals=0,
                                      bytes_accessed=bytes_accessed),
    )(w4, b_col, x_up)

    # Free reshape only: the flat lane axis already has the final row-major
    # (2H, 2W) ordering.
    return out_flat.reshape(N, Cout, kH * H, Wo)


def _reference(x_nchw, weight, bias):
    # out[n, co, 2i+ki, 2j+kj] = sum_ci x[n,ci,i,j] * W[ci,co,ki,kj] + b[co]
    N, Cin, H, W = x_nchw.shape
    _, Cout, kH, kW = weight.shape
    t = jnp.einsum('ncij,cokl->noikjl', x_nchw, weight)   # (N,Cout,H,kH,W,kW)
    t = t.reshape(N, Cout, H * kH, W * kW)
    return t + bias[None, :, None, None]


if __name__ == "__main__":
    key = jax.random.PRNGKey(0)
    k1, k2, k3 = jax.random.split(key, 3)

    N, Cin, Cout, H, W = 2, 4, 8, 16, 16

    x = jax.random.normal(k1, (N, Cin, H, W), dtype=jnp.float32)
    # PyTorch ConvTranspose2d weight shape: (Cin, Cout, kH, kW)
    fan = Cin * 2 * 2
    bound = 1.0 / (fan ** 0.5)
    weight = jax.random.uniform(k2, (Cin, Cout, 2, 2), jnp.float32, -bound, bound)
    bias = jax.random.uniform(k3, (Cout,), jnp.float32, -bound, bound)

    out = transpose_upsample(x, weight, bias)
    out = jax.block_until_ready(out)

    ref = _reference(x, weight, bias)
    assert out.shape == (N, Cout, 2 * H, 2 * W), out.shape
    assert jnp.allclose(out, ref, atol=1e-3, rtol=1e-3), "mismatch vs reference"

    print("KERNEL_OK")
</pallas_src>

<mosaic_0001>
module attributes {stable_mosaic.version = 11 : i64} {
  func.func @_upsample_kernel(%arg0: i32, %arg1: i32, %arg2: memref<4x8x4xf32, #tpu.memory_space<vmem>>, %arg3: memref<8x1xf32, #tpu.memory_space<vmem>>, %arg4: memref<1x4x1024xf32, #tpu.memory_space<vmem>>, %arg5: memref<1x8x1024xf32, #tpu.memory_space<vmem>>) attributes {dimension_semantics = [#tpu.dimension_semantics<parallel>, #tpu.dimension_semantics<parallel>], iteration_bounds = array<i64: 2, 1>, scalar_prefetch = 0 : i64, scratch_operands = 0 : i64, tpu.core_type = #tpu.core_type<tc>, window_params = [{pipeline_mode = #tpu.pipeline_mode<synchronous>, transform_indices = @transform_0, window_bounds = array<i64: 4, 8, 4>}, {pipeline_mode = #tpu.pipeline_mode<synchronous>, transform_indices = @transform_1, window_bounds = array<i64: 8, 1>}, {transform_indices = @transform_2, window_bounds = array<i64: 1, 4, 1024>}, {transform_indices = @transform_3, window_bounds = array<i64: 1, 8, 1024>}]} {
    %c0 = arith.constant 0 : index
    %c0_0 = arith.constant 0 : index
    %c0_1 = arith.constant 0 : index
    %0 = vector.load %arg4[%c0, %c0_0, %c0_1] : memref<1x4x1024xf32, #tpu.memory_space<vmem>>, vector<1x4x1024xf32>
    %1 = vector.shape_cast %0 : vector<1x4x1024xf32> to vector<4x1024xf32>
    %c0_2 = arith.constant 0 : index
    %c0_3 = arith.constant 0 : index
    %c0_4 = arith.constant 0 : index
    %2 = vector.load %arg2[%c0_2, %c0_3, %c0_4] : memref<4x8x4xf32, #tpu.memory_space<vmem>>, vector<1x8x4xf32>
    %3 = vector.shape_cast %2 : vector<1x8x4xf32> to vector<8x4xf32>
    %cst = arith.constant dense<0.000000e+00> : vector<8x1024xf32>
    %4 = tpu.matmul %3, %1, %cst {dimension_numbers = #tpu.dot_dimension_numbers<[1], [0], [0], [1], [0, 0, 1, 1], [], []>} : vector<8x4xf32>, vector<4x1024xf32>, vector<8x1024xf32> -> vector<8x1024xf32>
    %c1 = arith.constant 1 : index
    %c0_5 = arith.constant 0 : index
    %c0_6 = arith.constant 0 : index
    %5 = vector.load %arg2[%c1, %c0_5, %c0_6] : memref<4x8x4xf32, #tpu.memory_space<vmem>>, vector<1x8x4xf32>
    %6 = vector.shape_cast %5 : vector<1x8x4xf32> to vector<8x4xf32>
    %cst_7 = arith.constant dense<0.000000e+00> : vector<8x1024xf32>
    %7 = tpu.matmul %6, %1, %cst_7 {dimension_numbers = #tpu.dot_dimension_numbers<[1], [0], [0], [1], [0, 0, 1, 1], [], []>} : vector<8x4xf32>, vector<4x1024xf32>, vector<8x1024xf32> -> vector<8x1024xf32>
    %c2 = arith.constant 2 : index
    %c0_8 = arith.constant 0 : index
    %c0_9 = arith.constant 0 : index
    %8 = vector.load %arg2[%c2, %c0_8, %c0_9] : memref<4x8x4xf32, #tpu.memory_space<vmem>>, vector<1x8x4xf32>
    %9 = vector.shape_cast %8 : vector<1x8x4xf32> to vector<8x4xf32>
    %cst_10 = arith.constant dense<0.000000e+00> : vector<8x1024xf32>
    %10 = tpu.matmul %9, %1, %cst_10 {dimension_numbers = #tpu.dot_dimension_numbers<[1], [0], [0], [1], [0, 0, 1, 1], [], []>} : vector<8x4xf32>, vector<4x1024xf32>, vector<8x1024xf32> -> vector<8x1024xf32>
    %c3 = arith.constant 3 : index
    %c0_11 = arith.constant 0 : index
    %c0_12 = arith.constant 0 : index
    %11 = vector.load %arg2[%c3, %c0_11, %c0_12] : memref<4x8x4xf32, #tpu.memory_space<vmem>>, vector<1x8x4xf32>
    %12 = vector.shape_cast %11 : vector<1x8x4xf32> to vector<8x4xf32>
    %cst_13 = arith.constant dense<0.000000e+00> : vector<8x1024xf32>
    %13 = tpu.matmul %12, %1, %cst_13 {dimension_numbers = #tpu.dot_dimension_numbers<[1], [0], [0], [1], [0, 0, 1, 1], [], []>} : vector<8x4xf32>, vector<4x1024xf32>, vector<8x1024xf32> -> vector<8x1024xf32>
    %14 = tpu.iota {dimensions = array<i32: 1>} : vector<1x1024xi32>
    %c2_i32 = arith.constant 2 : i32
    %c0_i32 = arith.constant 0 : i32
    %15 = arith.cmpi eq, %c2_i32, %c0_i32 : i32
    %c1_i32 = arith.constant 1 : i32
    %16 = arith.select %15, %c1_i32, %c2_i32 : i32
    %17 = vector.broadcast %16 : i32 to vector<1x1024xi32>
    %18 = arith.remsi %14, %17 : vector<1x1024xi32>
    %c0_i32_14 = arith.constant 0 : i32
    %19 = vector.broadcast %c0_i32_14 : i32 to vector<1x1024xi32>
    %20 = arith.cmpi ne, %18, %19 : vector<1x1024xi32>
    %c0_i32_15 = arith.constant 0 : i32
    %21 = vector.broadcast %c0_i32_15 : i32 to vector<1x1024xi32>
    %22 = arith.cmpi slt, %18, %21 : vector<1x1024xi32>
    %c0_i32_16 = arith.constant 0 : i32
    %23 = arith.cmpi slt, %16, %c0_i32_16 : i32
    %24 = vector.broadcast %23 : i1 to vector<1x1024xi1>
    %25 = vector.broadcast %24 : vector<1x1024xi1> to vector<1x1024xi1>
    %26 = arith.xori %22, %25 : vector<1x1024xi1>
    %27 = arith.andi %26, %20 : vector<1x1024xi1>
    %28 = vector.broadcast %16 : i32 to vector<1x1024xi32>
    %29 = arith.addi %18, %28 : vector<1x1024xi32>
    %30 = arith.select %27, %29, %18 : vector<1x1024xi1>, vector<1x1024xi32>
    %c0_i32_17 = arith.constant 0 : i32
    %31 = vector.broadcast %c0_i32_17 : i32 to vector<1x1024xi32>
    %32 = arith.cmpi eq, %30, %31 : vector<1x1024xi32>
    %c64_i32 = arith.constant 64 : i32
    %c0_i32_18 = arith.constant 0 : i32
    %33 = arith.cmpi eq, %c64_i32, %c0_i32_18 : i32
    %c1_i32_19 = arith.constant 1 : i32
    %34 = arith.select %33, %c1_i32_19, %c64_i32 : i32
    %35 = vector.broadcast %34 : i32 to vector<1x1024xi32>
    %36 = arith.remsi %14, %35 : vector<1x1024xi32>
    %c0_i32_20 = arith.constant 0 : i32
    %37 = vector.broadcast %c0_i32_20 : i32 to vector<1x1024xi32>
    %38 = arith.cmpi ne, %36, %37 : vector<1x1024xi32>
    %c0_i32_21 = arith.constant 0 : i32
    %39 = vector.broadcast %c0_i32_21 : i32 to vector<1x1024xi32>
    %40 = arith.cmpi slt, %36, %39 : vector<1x1024xi32>
    %c0_i32_22 = arith.constant 0 : i32
    %41 = arith.cmpi slt, %34, %c0_i32_22 : i32
    %42 = vector.broadcast %41 : i1 to vector<1x1024xi1>
    %43 = vector.broadcast %42 : vector<1x1024xi1> to vector<1x1024xi1>
    %44 = arith.xori %40, %43 : vector<1x1024xi1>
    %45 = arith.andi %44, %38 : vector<1x1024xi1>
    %46 = vector.broadcast %34 : i32 to vector<1x1024xi32>
    %47 = arith.addi %36, %46 : vector<1x1024xi32>
    %48 = arith.select %45, %47, %36 : vector<1x1024xi1>, vector<1x1024xi32>
    %c32_i32 = arith.constant 32 : i32
    %49 = vector.broadcast %c32_i32 : i32 to vector<1x1024xi32>
    %50 = arith.cmpi slt, %48, %49 : vector<1x1024xi32>
    %51 = vector.shape_cast %32 : vector<1x1024xi1> to vector<1x1024xi1>
    %52 = vector.broadcast %51 : vector<1x1024xi1> to vector<8x1024xi1>
    %53 = arith.select %52, %4, %7 : vector<8x1024xi1>, vector<8x1024xf32>
    %54 = vector.shape_cast %32 : vector<1x1024xi1> to vector<1x1024xi1>
    %55 = vector.broadcast %54 : vector<1x1024xi1> to vector<8x1024xi1>
    %56 = arith.select %55, %10, %13 : vector<8x1024xi1>, vector<8x1024xf32>
    %57 = vector.shape_cast %50 : vector<1x1024xi1> to vector<1x1024xi1>
    %58 = vector.broadcast %57 : vector<1x1024xi1> to vector<8x1024xi1>
    %59 = arith.select %58, %53, %56 : vector<8x1024xi1>, vector<8x1024xf32>
    %c0_23 = arith.constant 0 : index
    %c0_24 = arith.constant 0 : index
    %60 = vector.load %arg3[%c0_23, %c0_24] : memref<8x1xf32, #tpu.memory_space<vmem>>, vector<8x1xf32>
    %61 = vector.broadcast %60 : vector<8x1xf32> to vector<8x1024xf32>
    %62 = arith.addf %59, %61 : vector<8x1024xf32>
    %c0_25 = arith.constant 0 : index
    %c0_26 = arith.constant 0 : index
    %c0_27 = arith.constant 0 : index
    %63 = vector.load %arg5[%c0_25, %c0_26, %c0_27] : memref<1x8x1024xf32, #tpu.memory_space<vmem>>, vector<1x8x1024xf32>
    %64 = vector.shape_cast %63 : vector<1x8x1024xf32> to vector<8x1024xf32>
    %65 = vector.shape_cast %62 : vector<8x1024xf32> to vector<1x8x1024xf32>
    tpu.vector_store %arg5[%c0_25, %c0_26, %c0_27], %65 {strides = array<i32>} : memref<1x8x1024xf32, #tpu.memory_space<vmem>>, vector<1x8x1024xf32>,
    return
  }
  func.func @transform_0(%arg0: i32, %arg1: i32) -> (i32, i32, i32) {
    %c0_i32 = arith.constant 0 : i32
    %c0_i32_0 = arith.constant 0 : i32
    %c0_i32_1 = arith.constant 0 : i32
    %c0_i32_2 = arith.constant 0 : i32
    return %c0_i32, %c0_i32_0, %c0_i32_1 : i32, i32, i32
  }
  func.func @transform_1(%arg0: i32, %arg1: i32) -> (i32, i32) {
    %c0_i32 = arith.constant 0 : i32
    %c0_i32_0 = arith.constant 0 : i32
    %c0_i32_1 = arith.constant 0 : i32
    return %c0_i32, %c0_i32_0 : i32, i32
  }
  func.func @transform_2(%arg0: i32, %arg1: i32) -> (i32, i32, i32) {
    %c0_i32 = arith.constant 0 : i32
    %c0_i32_0 = arith.constant 0 : i32
    return %arg0, %c0_i32, %arg1 : i32, i32, i32
  }
  func.func @transform_3(%arg0: i32, %arg1: i32) -> (i32, i32, i32) {
    %c0_i32 = arith.constant 0 : i32
    %c0_i32_0 = arith.constant 0 : i32
    return %arg0, %c0_i32, %arg1 : i32, i32, i32
  }
}

</mosaic_0001>

<bundles_post_ra>
// kernel: tpu_custom_call.1
= control target key start
LH: loop header
LB: loop body
LE: loop exit
PB: predicated region body
PF: predicated region fallthrough
CT: control target
= control target key end

     0   :  { %8 = vsyncpa [#allocation3], 0  ;;  %s2040_s0 = inlined_call_operand.vmem [shape: f32[4,8,4], index: 0, kind: input, shape index: {}]   ;;  %s2041_s1 = inlined_call_operand.vmem [shape: f32[8,1], index: 1, kind: input, shape index: {}]   ;;  %s2042_s2 = inlined_call_operand.hbm [shape: f32[2,4,1024], index: 2, kind: input, shape index: {}]   ;;  %s2043_s3 = inlined_call_operand.hbm [shape: f32[2,8,1024], index: 3, kind: output, shape index: {}]  }
   0x1   :  { %10 = vsyncpa [#allocation3 + $0x1], 0 }
   0x2   :  { %11 = vsyncpa [#allocation4], 0 }
   0x3   :  { %13 = vsyncpa [#allocation4 + $0x1], 0  ;;  %s1683_s12 = smov 0   ;;  %s1685_s13 = smov 0  }
   0x4   :  { %s1687_s14 = smov 0   ;;  %s1689_s15 = smov 0  }
   0x5   :  { %s1691_s16 = smov 0   ;;  %s1693_s17 = smov 0  }
   0x6 LB: > { %s1400_s18 = sadd.s32 4294967295, %s1660_s17   ;;  %s1401_s19 = sadd.s32 4294967294, %s1660_s17   ;;  %s1660_s17 = sphi %s1693_s17, %s19_s17   ;;  %s1656_s16 = sphi %s1691_s16, %s2068_s16   ;;  %s1652_s15 = sphi %s1689_s15, %s2067_s15   ;;  %s1648_s14 = sphi %s1687_s14, %s2066_s14   ;;  %s1644_s13 = sphi %s1685_s13, %s2065_s13   ;;  %s1640_s12 = sphi %s1683_s12, %s2064_s12  }
   0x7   : > { %s31_s20 = sadd.s32 1, %s1656_s16  ;;  %s82_s21 = sadd.s32 1, %s1648_s14 }
   0x8   : > { %p33_p0 = scmp.ge.s32.totalorder %s31_s20, 2  ;;  %p89_p1 = scmp.ne.s32.totalorder %s1648_s14, %s1644_s13 }
   0x9   : > { %p90_p2 = scmp.eq.s32.totalorder %s1660_s17, 0  ;;  %p95_p3 = scmp.ne.s32.totalorder %s1644_s13, %s1640_s12 }
   0xa   : > { %s2070_s20 = smov (%p33_p0, %s31_s20), 0  ;;  %p96_p5 = scmp.eq.s32.totalorder %s1400_s18, 0 }
   0xb   : > { %p1724_p4 = por %p90_p2, %p89_p1  ;;  %s77_s23 = ssub.s32 %s1656_s16, %s2070_s20 }
   0xc   : > { %p121_p6 = scmp.eq.s32.totalorder %s1400_s18, 1  ;;  %p80_p7 = scmp.eq.s32.totalorder %s77_s23, 0 }
   0xd   : > { %p1730_p8 = por %p96_p5, %p95_p3  ;;  %p127_p10 = scmp.eq.s32.totalorder %s1401_s19, 1 }
   0xe   : > { %p1734_p9 = por %p121_p6, %p89_p1  ;;  %p1403_p12 = scmp.ge.s32.totalorder %s1660_s17, 2 }
   0xf   : > { %s1739_s26 = scalar_select %p80_p7, %s1648_s14, %s82_s21  }
  0x10   : > { %p1741_p11 = por %p127_p10, %p95_p3  ;;  %p1496_p13 = scmp.lt.s32.totalorder %s1660_s17, 2 }
  0x11   : > { %s153_s28 = sand.u32 1, %s1648_s14   ;;  %s1482_s30 = sshll.u32 %s1656_s16, 5 }
  0x12   : > { %s1404_s29 = sshll.u32 %s153_s28, 5  ;;  %s164_s6 = scalar_lea.hbm %s2042_s2, %s1482_s30 }
  0x13   : > { %s157_s7 = scalar_lea.vmem [#allocation2], %s1404_s29  ;;  %s166_s9 = sshll.u32 %s164_s6, 4  ;;  %s167_s9 = int_to_ptr.hbm [resolvable:$true] %s166_s9 }
  0x14   : > { %s168_s8 = sshll.u32 %s157_s7, 4  ;;  %p1489_p0 = pnand %p1496_p13, %p1724_p4  ;;  %s169_s8 = int_to_ptr.vmem [resolvable:$true] %s168_s8 }
  0x15   : > { %p1407_p1 = scmp.ge.s32.totalorder %s1660_s17, 1  ;;  %p173_p2 = scmp.lt.s32.totalorder %s1660_s17, 3 }
  0x16   : > { %s154_s10 = scalar_lea.sflag [#allocation3], %s153_s28 }
  0x17   : > { %1491 = dma.hbm_to_vmem [thread:$0]  (!%p1489_p0), %s167_s9, 512, %s169_s8, %s154_s10  }
  0x18   : > { %p174_p3 = pnand %p1407_p1, %p173_p2 }
  0x19   : > { %s1757_s11 = sand.u32 (!%p174_p3), 1, %s1644_s13  }
  0x1a   : > { %177 = sbr.rel (%p174_p3) target bundleno = 240 (0xf0), region = 32  ;;  %s1408_s18 = sshll.u32 (!%p174_p3), %s1757_s11, 5 }
  0x1b   : > { %s180_s19 = scalar_lea.sflag (!%p174_p3), [#allocation3], %s1757_s11  ;;  %s183_s21 = scalar_lea.vmem (!%p174_p3), [#allocation2], %s1408_s18 }
  0x1f   : > { %1631 = dma.done.wait (%p1730_p8), %s180_s19, 512  }
  0x20   : > { %1633 = vsyncadd (%p1730_p8), %s180_s19, 4294966784  ;;  %v209_v0 = vld [vmem:[%s183_s21] sm:$0xff]  ;;  %v1765_v1 = vld [vmem:[%s183_s21 + $0x8] sm:$0xff]  ;;  %vm237_vm0 = vcmask 1043456   ;;  %vm233_vm1 = vcmask 31744   ;;  %v1662_v31 = vmov 0   ;;  %v1002_v56 = vlaneseq }
  0x21   : > { %218 = vst [vmem:[#allocation1] ss:$2 sm:$0xff] %v209_v0  ;;  %v1767_v2 = vld [vmem:[%s183_s21 + $0x18] sm:$0xff]  ;;  %v1769_v3 = vld [vmem:[%s183_s21 + $0x10] sm:$0xff]  ;;  %v1426_v21 = vld [vmem:[%s2040_s0 + $0x8] sm:$0xff]  ;;  %1547 = vset.pattern.permute.xlu0 %v1662_v31  ;;  %s1409_s8 = sshll.u32 %s1757_s11, 6 }
  0x22   : > { %220 = vst [vmem:[#allocation1 + $0x10] ss:$2 sm:$0xff] %v1765_v1  ;;  %v213_v4 = vld [vmem:[%s2040_s0] sm:$0xff]  ;;  %v1443_v32 = vld [vmem:[%s2040_s0 + $0x10] sm:$0xff]  ;;  %v1460_v41 = vld [vmem:[%s2040_s0 + $0x18] sm:$0xff]  ;;  %v1003_v61 = vand.u32 127, %v1002_v56 }
  0x23   : > { %224 = vst [vmem:[#allocation1 + $0x30] ss:$2 sm:$0xff] %v1767_v2  ;;  %v1275_v30 = vld [vmem:[%s2041_s1] sm:$0xff]  ;;  %s1935_s9 = scalar_lea.vmem [#allocation5], %s1409_s8  ;;  %s1483_s10 = sshll.u32 %s1652_s15, 6 }
  0x24   : > { %222 = vst [vmem:[#allocation1 + $0x20] ss:$2 sm:$0xff] %v1769_v3  ;;  %1278 = vperm.xlu0 %1547, %v1275_v30   ;;  %v1004_v62 = vadd.s32 128, %v1003_v61  ;;  %v1005_v63 = vadd.s32 256, %v1003_v61  ;;  %s1311_s21 = scalar_lea.hbm %s2043_s3, %s1483_s10  ;;  %s1313_s15 = sshll.u32 %s1935_s9, 4  ;;  %s1314_s15 = int_to_ptr.vmem [resolvable:$true] %s1313_s15 }
  0x25   : > { %s1315_s22 = sshll.u32 %s1311_s21, 4  ;;  %s1298_s23 = scalar_lea.sflag [#allocation4], %s1757_s11  ;;  %s1316_s22 = int_to_ptr.hbm [resolvable:$true] %s1315_s22 }
  0x26   : > { %s1592_s24 = sshra.s32 %s1316_s22, 4  ;;  %s1598_s4 = scalar_lea.hbm %s2043_s3, 128  ;;  %s1593_s24 = int_to_ptr.hbm [resolvable:$true] %s1592_s24 }
  0x27   : > { %s1594_s28 = scalar_lea.hbm %s1593_s24, 64  ;;  %p1599_p7 = scmp.lt.s32.totalorder %s1593_s24, %s2043_s3 }
  0x28   : > { %v225_v5 = vld.sshfl [vmem:[#allocation1] sm:$0xff pattern:$0x75316420]  ;;  %v226_v6 = vld.sshfl [vmem:[#allocation1 + $0x8] sm:$0xff pattern:$0x75316420]  ;;  %p1595_p4 = scmp.ne.s32.totalorder %s1593_s24, %s1594_s28  ;;  %p1600_p8 = scmp.lt.s32.totalorder %s1598_s4, %s1594_s28 }
  0x29   : > { %1410 = vmatpush.msk.msra.mxu0 %vm237_vm0, %v225_v5  ;;  %1412 = vmatpush.msk.msra.mxu1 %vm237_vm0, %v226_v6  ;;  %416 = vst [vmem:[#allocation1] ss:$2 sm:$0xff] %v209_v0  ;;  %v227_v7 = vld.sshfl [vmem:[#allocation1 + $0x10] sm:$0xff pattern:$0x75316420]  ;;  %v1015_v5 = vand.u32 1, %v1003_v61 }
  0x2a   : > { %1414 = vmatpush.msk.msra.mxu2 %vm237_vm0, %v227_v7  ;;  %v228_v8 = vld.sshfl [vmem:[#allocation1 + $0x18] sm:$0xff pattern:$0x75316420]  ;;  %1411 = vmatmul.msk.f32.vlgmr.msra.gmra.mxu0 %vm233_vm1, %v213_v4  ;;  %v231_v9 = vld.sshfl [vmem:[#allocation1 + $0x30] sm:$0xff pattern:$0x75316420]  ;;  %p1596_p5 = pnand %p1595_p4, %p1734_p9  ;;  %p1601_p10 = por %p1600_p8, %p1599_p7 }
  0x2b   : > { %1416 = vmatpush.msk.msra.mxu3 %vm237_vm0, %v228_v8  ;;  %418 = vst [vmem:[#allocation1 + $0x10] ss:$2 sm:$0xff] %v1765_v1  ;;  %1413 = vmatmul.msk.f32.vlgmr.msra.gmra.mxu1 %vm233_vm1, %v213_v4  ;;  %v232_v10 = vld.sshfl [vmem:[#allocation1 + $0x38] sm:$0xff pattern:$0x75316420]  ;;  %v1022_v6 = vand.u32 1, %v1004_v62 }
  0x2c   : > { %1415 = vmatmul.msk.f32.vlgmr.msra.gmra.mxu2 %vm233_vm1, %v213_v4  ;;  %1417 = vmatmul.msk.f32.vlgmr.msra.gmra.mxu3 %vm233_vm1, %v213_v4  ;;  %422 = vst [vmem:[#allocation1 + $0x30] ss:$2 sm:$0xff] %v1767_v2  ;;  %v229_v11 = vld.sshfl [vmem:[#allocation1 + $0x20] sm:$0xff pattern:$0x75316420]  ;;  %v1029_v7 = vand.u32 1, %v1005_v63  ;;  %p1597_p6 = pneg %p1596_p5 }
  0x2d   : > { %1422 = vmatpush.msk.msrb.mxu2 %vm237_vm0, %v231_v9  ;;  %1424 = vmatpush.msk.msrb.mxu3 %vm237_vm0, %v232_v10  ;;  %v230_v12 = vld.sshfl [vmem:[#allocation1 + $0x28] sm:$0xff pattern:$0x75316420]  ;;  %v1119_v9 = vand.u32 63, %v1003_v61  ;;  %v1126_v10 = vand.u32 63, %v1004_v62  ;;  %vm1894_vm2 = vcmp.eq.s32.totalorder %v1015_v5, 0 }
  0x2e   : > { %1418 = vmatpush.msk.msrb.mxu0 %vm237_vm0, %v229_v11  ;;  %1420 = vmatpush.msk.msrb.mxu1 %vm237_vm0, %v230_v12  ;;  %420 = vst [vmem:[#allocation1 + $0x20] ss:$2 sm:$0xff] %v1769_v3  ;;  %v1007_v11 = vadd.s32 512, %v1003_v61  ;;  %v1008_v12 = vadd.s32 640, %v1003_v61  ;;  %vm1898_vm3 = vcmp.eq.s32.totalorder %v1022_v6, 0  ;;  %vm1904_vm4 = vcmp.eq.s32.totalorder %v1029_v7, 0  ;;  %p1602_p13 = pnand %p1601_p10, %p1597_p6 }
  0x2f   : > { %vm1211_vm6 = vcmp.lt.s32.totalorder %v1119_v9, 32  ;;  %vm1212_vm7 = vcmp.lt.s32.totalorder %v1126_v10, 32 }
  0x30   : > { %v423_v13 = vld.sshfl [vmem:[#allocation1] sm:$0xff pattern:$0x75316420]  ;;  %v424_v14 = vld.sshfl [vmem:[#allocation1 + $0x8] sm:$0xff pattern:$0x75316420] }
  0x31   : > { %1427 = vmatpush.msk.msra.mxu0 %vm237_vm0, %v423_v13  ;;  %1429 = vmatpush.msk.msra.mxu1 %vm237_vm0, %v424_v14  ;;  %612 = vst [vmem:[#allocation1] ss:$2 sm:$0xff] %v209_v0 }
  0x32   : > { %1419 = vmatmul.msk.f32.vlgmr.msrb.gmra.mxu0 %vm233_vm1, %v213_v4  ;;  %v425_v15 = vld.sshfl [vmem:[#allocation1 + $0x10] sm:$0xff pattern:$0x75316420]  ;;  %v426_v16 = vld.sshfl [vmem:[#allocation1 + $0x18] sm:$0xff pattern:$0x75316420] }
  0x33   : > { %1421 = vmatmul.msk.f32.vlgmr.msrb.gmra.mxu1 %vm233_vm1, %v213_v4  ;;  %1431 = vmatpush.msk.msra.mxu2 %vm237_vm0, %v425_v15  ;;  %614 = vst [vmem:[#allocation1 + $0x10] ss:$2 sm:$0xff] %v1765_v1  ;;  %v429_v17 = vld.sshfl [vmem:[#allocation1 + $0x30] sm:$0xff pattern:$0x75316420] }
  0x34   : > { %1423 = vmatmul.msk.f32.vlgmr.msrb.gmra.mxu2 %vm233_vm1, %v213_v4  ;;  %1425 = vmatmul.msk.f32.vlgmr.msrb.gmra.mxu3 %vm233_vm1, %v213_v4  ;;  %v430_v18 = vld.sshfl [vmem:[#allocation1 + $0x38] sm:$0xff pattern:$0x75316420] }
  0x35   : > { %1433 = vmatpush.msk.msra.mxu3 %vm237_vm0, %v426_v16  ;;  %1439 = vmatpush.msk.msrb.mxu2 %vm237_vm0, %v429_v17  ;;  %618 = vst [vmem:[#allocation1 + $0x30] ss:$2 sm:$0xff] %v1767_v2  ;;  %v427_v19 = vld.sshfl [vmem:[#allocation1 + $0x20] sm:$0xff pattern:$0x75316420] }
  0x36   : > { %1435 = vmatpush.msk.msrb.mxu0 %vm237_vm0, %v427_v19  ;;  %v428_v20 = vld.sshfl [vmem:[#allocation1 + $0x28] sm:$0xff pattern:$0x75316420] }
  0x37   : > { %1441 = vmatpush.msk.msrb.mxu3 %vm237_vm0, %v430_v18  ;;  %1437 = vmatpush.msk.msrb.mxu1 %vm237_vm0, %v428_v20  ;;  %616 = vst [vmem:[#allocation1 + $0x20] ss:$2 sm:$0xff] %v1769_v3  ;;  %v1043_v20 = vand.u32 1, %v1007_v11 }
  0x38   : > { %v619_v22 = vld.sshfl [vmem:[#allocation1] sm:$0xff pattern:$0x75316420]  ;;  %v620_v23 = vld.sshfl [vmem:[#allocation1 + $0x8] sm:$0xff pattern:$0x75316420] }
  0x39   : > { %808 = vst [vmem:[#allocation1] ss:$2 sm:$0xff] %v209_v0  ;;  %v1006_v0 = vadd.s32 384, %v1003_v61  ;;  %vm1927_vm8 = vcmp.eq.s32.totalorder %v1043_v20, 0 }
  0x3a   : > { %1428 = vmatmul.msk.f32.vlgmr.msra.gmra.mxu0 %vm233_vm1, %v1426_v21  ;;  %v621_v24 = vld.sshfl [vmem:[#allocation1 + $0x10] sm:$0xff pattern:$0x75316420]  ;;  %v622_v25 = vld.sshfl [vmem:[#allocation1 + $0x18] sm:$0xff pattern:$0x75316420] }
  0x3b   : > { %1430 = vmatmul.msk.f32.vlgmr.msra.gmra.mxu1 %vm233_vm1, %v1426_v21  ;;  %810 = vst [vmem:[#allocation1 + $0x10] ss:$2 sm:$0xff] %v1765_v1  ;;  %1444 = vmatpush.msk.msra.mxu0 %vm237_vm0, %v619_v22  ;;  %v1036_v8 = vand.u32 1, %v1006_v0  ;;  %v1009_v22 = vadd.s32 768, %v1003_v61 }
  0x3c   : > { %1432 = vmatmul.msk.f32.vlgmr.msra.gmra.mxu2 %vm233_vm1, %v1426_v21  ;;  %1434 = vmatmul.msk.f32.vlgmr.msra.gmra.mxu3 %vm233_vm1, %v1426_v21  ;;  %v625_v26 = vld.sshfl [vmem:[#allocation1 + $0x30] sm:$0xff pattern:$0x75316420]  ;;  %v626_v27 = vld.sshfl [vmem:[#allocation1 + $0x38] sm:$0xff pattern:$0x75316420] }
  0x3d   : > { %1448 = vmatpush.msk.msra.mxu2 %vm237_vm0, %v621_v24  ;;  %1450 = vmatpush.msk.msra.mxu3 %vm237_vm0, %v622_v25  ;;  %814 = vst [vmem:[#allocation1 + $0x30] ss:$2 sm:$0xff] %v1767_v2  ;;  %vm1908_vm5 = vcmp.eq.s32.totalorder %v1036_v8, 0 }
  0x3e   : > { %1446 = vmatpush.msk.msra.mxu1 %vm237_vm0, %v620_v23  ;;  %v623_v28 = vld.sshfl [vmem:[#allocation1 + $0x20] sm:$0xff pattern:$0x75316420]  ;;  %v624_v29 = vld.sshfl [vmem:[#allocation1 + $0x28] sm:$0xff pattern:$0x75316420] }
  0x3f   : > { %812 = vst [vmem:[#allocation1 + $0x20] ss:$2 sm:$0xff] %v1769_v3  ;;  %v1010_v23 = vadd.s32 896, %v1003_v61 }
  0x40   : > { %v815_v33 = vld.sshfl [vmem:[#allocation1] sm:$0xff pattern:$0x75316420]  ;;  %v816_v36 = vld.sshfl [vmem:[#allocation1 + $0x8] sm:$0xff pattern:$0x75316420] }
  0x42   : > { %1436 = vmatmul.msk.f32.vlgmr.msrb.gmra.mxu0 %vm233_vm1, %v1426_v21  ;;  %v817_v34 = vld.sshfl [vmem:[#allocation1 + $0x10] sm:$0xff pattern:$0x75316420]  ;;  %v818_v35 = vld.sshfl [vmem:[#allocation1 + $0x18] sm:$0xff pattern:$0x75316420] }
  0x43   : > { %1438 = vmatmul.msk.f32.vlgmr.msrb.gmra.mxu1 %vm233_vm1, %v1426_v21  ;;  %1452 = vmatpush.msk.msrb.mxu0 %vm237_vm0, %v623_v28 }
  0x44   : > { %1440 = vmatmul.msk.f32.vlgmr.msrb.gmra.mxu2 %vm233_vm1, %v1426_v21  ;;  %1442 = vmatmul.msk.f32.vlgmr.msrb.gmra.mxu3 %vm233_vm1, %v1426_v21  ;;  %v821_v38 = vld.sshfl [vmem:[#allocation1 + $0x30] sm:$0xff pattern:$0x75316420]  ;;  %v822_v39 = vld.sshfl [vmem:[#allocation1 + $0x38] sm:$0xff pattern:$0x75316420] }
  0x45   : > { %1456 = vmatpush.msk.msrb.mxu2 %vm237_vm0, %v625_v26  ;;  %1458 = vmatpush.msk.msrb.mxu3 %vm237_vm0, %v626_v27  ;;  %v1050_v21 = vand.u32 1, %v1008_v12 }
  0x46   : > { %1454 = vmatpush.msk.msrb.mxu1 %vm237_vm0, %v624_v29  ;;  %v819_v37 = vld.sshfl [vmem:[#allocation1 + $0x20] sm:$0xff pattern:$0x75316420]  ;;  %v820_v40 = vld.sshfl [vmem:[#allocation1 + $0x28] sm:$0xff pattern:$0x75316420] }
  0x47   : > { %vm1931_vm9 = vcmp.eq.s32.totalorder %v1050_v21, 0 }
  0x4a   : > { %1445 = vmatmul.msk.f32.vlgmr.msra.gmra.mxu0 %vm233_vm1, %v1443_v32 }
  0x4b   : > { %1447 = vmatmul.msk.f32.vlgmr.msra.gmra.mxu1 %vm233_vm1, %v1443_v32  ;;  %1461 = vmatpush.msk.msra.mxu0 %vm237_vm0, %v815_v33  ;;  %v1140_v33 = vand.u32 63, %v1006_v0 }
  0x4c   : > { %1449 = vmatmul.msk.f32.vlgmr.msra.gmra.mxu2 %vm233_vm1, %v1443_v32  ;;  %1451 = vmatmul.msk.f32.vlgmr.msra.gmra.mxu3 %vm233_vm1, %v1443_v32 }
  0x4d   : > { %1465 = vmatpush.msk.msra.mxu2 %vm237_vm0, %v817_v34  ;;  %1467 = vmatpush.msk.msra.mxu3 %vm237_vm0, %v818_v35  ;;  %vm1214_vm11 = vcmp.lt.s32.totalorder %v1140_v33, 32 }
  0x4e   : > { %1463 = vmatpush.msk.msra.mxu1 %vm237_vm0, %v816_v36  ;;  %v1147_v36 = vand.u32 63, %v1007_v11 }
  0x50   : > { %vm1215_vm12 = vcmp.lt.s32.totalorder %v1147_v36, 32 }
  0x52   : > { %1453 = vmatmul.msk.f32.vlgmr.msrb.gmra.mxu0 %vm233_vm1, %v1443_v32 }
  0x53   : > { %1455 = vmatmul.msk.f32.vlgmr.msrb.gmra.mxu1 %vm233_vm1, %v1443_v32  ;;  %1469 = vmatpush.msk.msrb.mxu0 %vm237_vm0, %v819_v37  ;;  %v1154_v37 = vand.u32 63, %v1008_v12 }
  0x54   : > { %1457 = vmatmul.msk.f32.vlgmr.msrb.gmra.mxu2 %vm233_vm1, %v1443_v32  ;;  %1459 = vmatmul.msk.f32.vlgmr.msrb.gmra.mxu3 %vm233_vm1, %v1443_v32  ;;  %v1133_v32 = vand.u32 63, %v1005_v63 }
  0x55   : > { %1473 = vmatpush.msk.msrb.mxu2 %vm237_vm0, %v821_v38  ;;  %1475 = vmatpush.msk.msrb.mxu3 %vm237_vm0, %v822_v39  ;;  %vm1216_vm13 = vcmp.lt.s32.totalorder %v1154_v37, 32 }
  0x56   : > { %1471 = vmatpush.msk.msrb.mxu1 %vm237_vm0, %v820_v40  ;;  %v1057_v40 = vand.u32 1, %v1009_v22  ;;  %vm1213_vm10 = vcmp.lt.s32.totalorder %v1133_v32, 32 }
  0x58   : > { %vm1973_vm14 = vcmp.eq.s32.totalorder %v1057_v40, 0 }
  0x5a   : > { %1462 = vmatmul.msk.f32.vlgmr.msra.gmra.mxu0 %vm233_vm1, %v1460_v41 }
  0x5b   : > { %1464 = vmatmul.msk.f32.vlgmr.msra.gmra.mxu1 %vm233_vm1, %v1460_v41 }
  0x5c   : > { %1466 = vmatmul.msk.f32.vlgmr.msra.gmra.mxu2 %vm233_vm1, %v1460_v41  ;;  %1468 = vmatmul.msk.f32.vlgmr.msra.gmra.mxu3 %vm233_vm1, %v1460_v41 }
  0x62   : > { %1470 = vmatmul.msk.f32.vlgmr.msrb.gmra.mxu0 %vm233_vm1, %v1460_v41 }
  0x63   : > { %1472 = vmatmul.msk.f32.vlgmr.msrb.gmra.mxu1 %vm233_vm1, %v1460_v41 }
  0x64   : > { %1474 = vmatmul.msk.f32.vlgmr.msrb.gmra.mxu2 %vm233_vm1, %v1460_v41  ;;  %1476 = vmatmul.msk.f32.vlgmr.msrb.gmra.mxu3 %vm233_vm1, %v1460_v41  ;;  %v1064_v41 = vand.u32 1, %v1010_v23 }
  0x66   : > { %vm1977_vm15 = vcmp.eq.s32.totalorder %v1064_v41, 0 }
  0x96   : > { %v1902_v15 = vpop.permute.xlu0 %1278 }
  0xa7   : > { %v271_v42 = vpop.f32.mrf.mxu0 }
  0xa8   : > { %v291_v43 = vpop.f32.mrf.mxu1 }
  0xaf   : > { %v1862_v44 = vpop.f32.mrf.mxu2  ;;  %v1864_v45 = vpop.f32.mrf.mxu3 }
  0xb0   : > { %v1866_v46 = vpop.f32.mrf.mxu0  ;;  %v1868_v47 = vpop.f32.mrf.mxu1 }
  0xb7   : > { %v1870_v48 = vpop.f32.mrf.mxu2  ;;  %v1872_v49 = vpop.f32.mrf.mxu3 }
  0xb8   : > { %v467_v50 = vpop.f32.mrf.mxu0  ;;  %v487_v51 = vpop.f32.mrf.mxu1 }
  0xb9   : > { %v1235_v26 = vsel %vm1894_vm2, %v271_v42, %v467_v50  ;;  %v1236_v27 = vsel %vm1898_vm3, %v291_v43, %v487_v51 }
  0xbf   : > { %v1874_v52 = vpop.f32.mrf.mxu2  ;;  %v1876_v53 = vpop.f32.mrf.mxu3 }
  0xc0   : > { %v1878_v54 = vpop.f32.mrf.mxu0  ;;  %v1880_v55 = vpop.f32.mrf.mxu1  ;;  %v1237_v42 = vsel %vm1904_vm4, %v1862_v44, %v1874_v52  ;;  %v1238_v43 = vsel %vm1908_vm5, %v1864_v45, %v1876_v53 }
  0xc1   : > { %v1239_v50 = vsel %vm1927_vm8, %v1866_v46, %v1878_v54  ;;  %v1240_v51 = vsel %vm1931_vm9, %v1868_v47, %v1880_v55  ;;  %v1161_v54 = vand.u32 63, %v1009_v22 }
  0xc3   : > { %vm1217_vm0 = vcmp.lt.s32.totalorder %v1161_v54, 32 }
  0xc7   : > { %v1882_v57 = vpop.f32.mrf.mxu2  ;;  %v1884_v58 = vpop.f32.mrf.mxu3 }
  0xc8   : > { %v663_v59 = vpop.f32.mrf.mxu0  ;;  %v683_v60 = vpop.f32.mrf.mxu1  ;;  %v1241_v8 = vsel %vm1973_vm14, %v1870_v48, %v1882_v57  ;;  %v1242_v9 = vsel %vm1977_vm15, %v1872_v49, %v1884_v58 }
  0xcf   : > { %v1886_v1 = vpop.f32.mrf.mxu2  ;;  %v1888_v2 = vpop.f32.mrf.mxu3 }
  0xd0   : > { %v1890_v3 = vpop.f32.mrf.mxu0  ;;  %v1892_v4 = vpop.f32.mrf.mxu1 }
  0xd7   : > { %v1912_v18 = vpop.f32.mrf.mxu2  ;;  %v1914_v19 = vpop.f32.mrf.mxu3 }
  0xd8   : > { %v859_v24 = vpop.f32.mrf.mxu0  ;;  %v879_v25 = vpop.f32.mrf.mxu1 }
  0xd9   : > { %v1243_v28 = vsel %vm1894_vm2, %v663_v59, %v859_v24  ;;  %v1244_v29 = vsel %vm1898_vm3, %v683_v60, %v879_v25  ;;  %v1168_v59 = vand.u32 63, %v1010_v23 }
  0xda   : > { %v1267_v30 = vsel %vm1211_vm6, %v1235_v26, %v1243_v28  ;;  %v1268_v31 = vsel %vm1212_vm7, %v1236_v27, %v1244_v29 }
  0xdb   : > { %v1281_v34 = vadd.f32 %v1902_v15, %v1267_v30  ;;  %v1282_v35 = vadd.f32 %v1902_v15, %v1268_v31  ;;  %vm1218_vm1 = vcmp.lt.s32.totalorder %v1168_v59, 32 }
  0xdd   : > { %1289 = vst [vmem:[%s1935_s9] sm:$0xff] %v1281_v34 }
  0xde   : > { %1290 = vst [vmem:[%s1935_s9 + $0x8] sm:$0xff] %v1282_v35 }
  0xdf   : > { %v899_v56 = vpop.f32.mrf.mxu2  ;;  %v919_v44 = vpop.f32.mrf.mxu3 }
  0xe0   : > { %v1245_v45 = vsel %vm1904_vm4, %v1886_v1, %v899_v56  ;;  %v1246_v52 = vsel %vm1908_vm5, %v1888_v2, %v919_v44  ;;  %v939_v46 = vpop.f32.mrf.mxu0  ;;  %v959_v53 = vpop.f32.mrf.mxu1 }
  0xe1   : > { %v1269_v47 = vsel %vm1213_vm10, %v1237_v42, %v1245_v45  ;;  %v1270_v55 = vsel %vm1214_vm11, %v1238_v43, %v1246_v52  ;;  %v1247_v60 = vsel %vm1927_vm8, %v1890_v3, %v939_v46  ;;  %v1248_v61 = vsel %vm1931_vm9, %v1892_v4, %v959_v53 }
  0xe2   : > { %v1283_v62 = vadd.f32 %v1902_v15, %v1269_v47  ;;  %v1284_v63 = vadd.f32 %v1902_v15, %v1270_v55  ;;  %v1271_v0 = vsel %vm1215_vm12, %v1239_v50, %v1247_v60  ;;  %v1272_v1 = vsel %vm1216_vm13, %v1240_v51, %v1248_v61 }
  0xe3   : > { %v1285_v2 = vadd.f32 %v1902_v15, %v1271_v0  ;;  %v1286_v5 = vadd.f32 %v1902_v15, %v1272_v1 }
  0xe4   : > { %1291 = vst [vmem:[%s1935_s9 + $0x10] sm:$0xff] %v1283_v62 }
  0xe5   : > { %1292 = vst [vmem:[%s1935_s9 + $0x18] sm:$0xff] %v1284_v63 }
  0xe6   : > { %1293 = vst [vmem:[%s1935_s9 + $0x20] sm:$0xff] %v1285_v2 }
  0xe7   : > { %1294 = vst [vmem:[%s1935_s9 + $0x28] sm:$0xff] %v1286_v5  ;;  %v979_v6 = vpop.f32.mrf.mxu2  ;;  %v999_v7 = vpop.f32.mrf.mxu3 }
  0xe8   : > { %v1249_v10 = vsel %vm1973_vm14, %v1912_v18, %v979_v6  ;;  %v1250_v11 = vsel %vm1977_vm15, %v1914_v19, %v999_v7 }
  0xe9   : > { %v1273_v12 = vsel %vm1217_vm0, %v1241_v8, %v1249_v10  ;;  %v1274_v13 = vsel %vm1218_vm1, %v1242_v9, %v1250_v11 }
  0xea   : > { %v1287_v48 = vadd.f32 %v1902_v15, %v1273_v12  ;;  %v1288_v57 = vadd.f32 %v1902_v15, %v1274_v13 }
  0xec   : > { %1295 = vst [vmem:[%s1935_s9 + $0x30] sm:$0xff] %v1287_v48 }
  0xed   : > { %1296 = vst [vmem:[%s1935_s9 + $0x38] sm:$0xff] %v1288_v57 }
  0xee   : > { %1605 = shalt.err (!%p1602_p13)
}
  0xef   : > { %1486 = dma.vmem_to_hbm [thread:$0]  (%p1734_p9), %s1314_s15, 1024, %s1316_s22, %s1298_s23  }
  0xf0 PF: > { %s1327_s11 = sand.u32 1, %s1640_s12   ;;  %p1493_p0 = pnand %p1403_p12, %p1741_p11 }
  0xf1   : > { %s1328_s7 = scalar_lea.sflag [#allocation4], %s1327_s11 }
  0xf2   : > { %p1494_p1 = pneg %p1493_p0 }
  0xf4   : > { %1635 = dma.done.wait (%p1494_p1), %s1328_s7, 1024  }
  0xf5   : > { %1637 = vsyncadd (%p1494_p1), %s1328_s7, 4294966272  ;;  %s19_s17 = sadd.s32 1, %s1660_s17   ;;  %s2064_s12 = smov %s1644_s13 }
  0xf6   : > { %p16_p2 = scmp.ge.s32.totalorder %s19_s17, 4   ;;  %s2065_s13 = smov %s1648_s14 }
  0xf7   : > { %s2066_s14 = smov %s1739_s26  ;;  %s2067_s15 = smov %s1656_s16 }
  0xf8   : > { %s2068_s16 = smov %s2070_s20  ;;  %18 = sbr.rel (!%p16_p2) target bundleno = 6 (0x6), region = 92 }
  0xfd   :  { %1334 = vsyncpa [#allocation3], 1 }
  0xfe   :  { %1336 = vsyncpa [#allocation3 + $0x1], 1 }
  0xff   :  { %1337 = vsyncpa [#allocation4], 1 }
 0x100   :  { %1339 = vsyncpa [#allocation4 + $0x1], 1 }

</bundles_post_ra>
